<compile_context>
chip_gen: v5e
topology: v5e:2x2
jax: 0.10.0
libtpu: 0.0.40
codegen_flags: <defaults>
</compile_context>

<pallas_src>
import functools
import math

import jax
import jax.numpy as jnp
from jax.experimental import pallas as pl
from jax.experimental.pallas import tpu as pltpu


def _equiv_linear_kernel(x_ref, alpha_ref, beta_ref, bias_ref, y_ref, *, inv_m):
    # x_ref:    (TILE_N, M_pad, F_in)   current tile of sets (M padded to %8==0)
    # alpha_ref:(F_in, F_out)           equivariant weights
    # beta_ref: (F_in, F_out)           invariant weights
    # bias_ref: (1, F_out)
    # y_ref:    (TILE_N, M_pad*F_out)   lane-dense output block
    #        or (TILE_N, M_pad, F_out)  fallback when M_pad*F_out % 128 != 0
    tile_n, m_p, f_in = x_ref.shape
    f_out = alpha_ref.shape[1]

    x = x_ref[...]                                            # (TILE_N, M_pad, F_in)

    # Permutation-invariant part, batched over the whole tile of sets:
    # one (TILE_N, F_in) @ (F_in, F_out) matmul. Padded elements are zero, so
    # the sum is exact; divide by the true set size M (inv_m).
    mean_x = jnp.sum(x, axis=1) * inv_m                       # (TILE_N, F_in)
    h_inv = jnp.dot(mean_x, beta_ref[...],
                    preferred_element_type=jnp.float32)
    h_inv = h_inv + bias_ref[...].astype(jnp.float32)         # (TILE_N, F_out)

    # Permutation-equivariant part: flatten the tile into a large-row MXU
    # matmul. M_pad % 8 == 0, so this reshape is a sublane-aligned view.
    x2 = x.reshape(tile_n * m_p, f_in)                        # (TILE_N*M_pad, F_in)
    y2 = jnp.dot(x2, alpha_ref[...],
                 preferred_element_type=jnp.float32)          # (TILE_N*M_pad, F_out)

    y = y2.reshape(tile_n, m_p, f_out) + h_inv[:, None, :]    # (TILE_N, M_pad, F_out)
    y_ref[...] = y.reshape(y_ref.shape).astype(y_ref.dtype)


def _pick_tile_n(n, m_p, f_in, f_out, *, target_rows=2048, budget_bytes=8 << 20):
    """Sets-per-step tile that keeps the flattened matmul LHS around
    `target_rows` rows and fits a VMEM budget for the double-buffered x/y
    tiles plus in-kernel temporaries (lane padding counted at 128)."""
    itemsize = 4
    t = max(1, target_rows // max(1, m_p))
    per_set = 6 * m_p * max(f_in, f_out, 128) * itemsize
    t = min(t, max(1, budget_bytes // per_set))
    t = min(t, max(1, n))
    # Multiple of 8 so the second-minor dim of the 2-D lane-dense output block
    # stays sublane-aligned.
    return max(8, -(-t // 8) * 8)


def _vmem_limit_bytes(tile_n, m_p, f_in, f_out):
    itemsize = 4
    x_tile = tile_n * m_p * max(f_in, 128) * itemsize
    y_tile = tile_n * m_p * max(f_out, 128) * itemsize
    weights = (2 * f_in * f_out + f_out) * itemsize
    # Double-buffered x/y tiles, (double-buffered) weights, relayout/temporary
    # copies inside the kernel, plus fixed headroom.
    need = 2 * (x_tile + y_tile) + 2 * weights + 6 * max(x_tile, y_tile) + (4 << 20)
    return int(min(64 << 20, max(32 << 20, need)))


def equiv_linear(x, alpha, beta, bias, *, tile_n=None):
    """x: (N, M, F_in); alpha/beta: (F_in, F_out); bias: (1, F_out).
    Returns Y: (N, M, F_out) with y_i = x_i @ alpha + (mean_M(X) @ beta + bias)."""
    n, m, f_in = x.shape
    f_out = alpha.shape[1]
    dtype = x.dtype

    # Pad the set size to a multiple of 8 (sublane alignment for the in-kernel
    # flatten). Padded elements are zeros and never affect the sum; the mean
    # uses the true M (mask=None => every set has exactly M valid elements).
    m_pad = (-m) % 8
    m_p = m + m_pad
    if m_pad:
        x = jnp.pad(x, ((0, 0), (0, m_pad), (0, 0)))

    if tile_n is None:
        tile_n = _pick_tile_n(n, m_p, f_in, f_out)
    tile_n = max(8, -(-int(tile_n) // 8) * 8)   # enforce sublane alignment

    # Pad the set-batch so the grid has only full tiles; padded sets are all
    # zeros, never mix with real sets, and are sliced off below.
    n_pad = (-n) % tile_n
    if n_pad:
        x = jnp.pad(x, ((0, n_pad), (0, 0), (0, 0)))
    n_padded = n + n_pad
    grid = (n_padded // tile_n,)

    # Lane-dense output: store (TILE_N, M_pad*F_out) blocks when M_pad*F_out is
    # a multiple of 128 (full, unmasked vector stores); otherwise fall back to
    # the natural (TILE_N, M_pad, F_out) block.
    lane_dense = (m_p * f_out) % 128 == 0 and f_out % 128 != 0
    if lane_dense:
        out_shape = jax.ShapeDtypeStruct((n_padded, m_p * f_out), dtype)
        out_spec = pl.BlockSpec((tile_n, m_p * f_out), lambda i: (i, 0))
    else:
        out_shape = jax.ShapeDtypeStruct((n_padded, m_p, f_out), dtype)
        out_spec = pl.BlockSpec((tile_n, m_p, f_out), lambda i: (i, 0, 0))

    itemsize = jnp.dtype(dtype).itemsize
    cost = pl.CostEstimate(
        flops=2 * n_padded * m_p * f_in * f_out + 2 * n_padded * f_in * f_out,
        transcendentals=0,
        bytes_accessed=(n_padded * m_p * (f_in + f_out) * itemsize
                        + (2 * f_in * f_out + f_out) * 4),
    )

    kernel = functools.partial(_equiv_linear_kernel, inv_m=1.0 / m)

    y = pl.pallas_call(
        kernel,
        out_shape=out_shape,
        grid_spec=pltpu.PrefetchScalarGridSpec(
            num_scalar_prefetch=0,
            grid=grid,
            in_specs=[
                pl.BlockSpec((tile_n, m_p, f_in), lambda i: (i, 0, 0)),
                # Weight/bias block indices are constant across the grid, so
                # Pallas only DMAs them once (no re-fetch per step).
                pl.BlockSpec((f_in, f_out), lambda i: (0, 0)),
                pl.BlockSpec((f_in, f_out), lambda i: (0, 0)),
                pl.BlockSpec((1, f_out), lambda i: (0, 0)),
            ],
            out_specs=out_spec,
        ),
        compiler_params=pltpu.CompilerParams(
            dimension_semantics=("parallel",),
            vmem_limit_bytes=_vmem_limit_bytes(tile_n, m_p, f_in, f_out),
        ),
        cost_estimate=cost,
    )(x, alpha, beta, bias)

    if lane_dense:
        y = y.reshape(n_padded, m_p, f_out)
    if n_pad or m_pad:
        y = y[:n, :m]
    return y


# ---------------------------------------------------------------------------
# Parameter init matching the PyTorch module, plus a pure-JAX reference.
# ---------------------------------------------------------------------------
def _xavier_uniform(key, fan_in, fan_out):
    bound = math.sqrt(6.0 / (fan_in + fan_out))
    return jax.random.uniform(key, (fan_in, fan_out), jnp.float32, -bound, bound)


def init_equiv_linear_params(key, in_features, out_features):
    k_beta, k_bias, k_alpha = jax.random.split(key, 3)
    beta = _xavier_uniform(k_beta, in_features, out_features)
    alpha = _xavier_uniform(k_alpha, in_features, out_features)
    bound = 1.0 / math.sqrt(in_features)
    bias = jax.random.uniform(k_bias, (1, out_features), jnp.float32, -bound, bound)
    return alpha, beta, bias


def equiv_linear_ref(x, alpha, beta, bias):
    h_inv = jnp.mean(x, axis=1) @ beta + bias          # (N, F_out)
    return x @ alpha + h_inv[:, None, :]               # (N, M, F_out)


if __name__ == "__main__":
    key = jax.random.PRNGKey(0)
    k_x, k_p, k_x2, k_p2 = jax.random.split(key, 4)

    # Config A: M already sublane-aligned, lane-dense output path
    # (M*F_out = 256), exercises auto tile (N-padding 20 -> 24) and an
    # explicit multi-step grid (3 steps of 8 sets).
    N, M, F_in, F_out = 20, 8, 32, 32
    x = jax.random.normal(k_x, (N, M, F_in), jnp.float32)
    alpha, beta, bias = init_equiv_linear_params(k_p, F_in, F_out)

    y_ref = equiv_linear_ref(x, alpha, beta, bias)
    y_auto = jax.block_until_ready(equiv_linear(x, alpha, beta, bias))
    y_tiled = jax.block_until_ready(equiv_linear(x, alpha, beta, bias, tile_n=8))

    assert y_auto.shape == (N, M, F_out)
    assert y_tiled.shape == (N, M, F_out)
    assert jnp.allclose(y_auto, y_ref, atol=1e-4, rtol=1e-5), "auto-tile mismatch vs reference"
    assert jnp.allclose(y_tiled, y_ref, atol=1e-4, rtol=1e-5), "tiled mismatch vs reference"

    # Config B: ragged M (5 -> padded to 8) and a set/feature combo whose
    # M_pad*F_out is not a multiple of 128 (3-D fallback output path).
    N2, M2, F_in2, F_out2 = 6, 5, 24, 40
    x2 = jax.random.normal(k_x2, (N2, M2, F_in2), jnp.float32)
    alpha2, beta2, bias2 = init_equiv_linear_params(k_p2, F_in2, F_out2)

    y2_ref = equiv_linear_ref(x2, alpha2, beta2, bias2)
    y2 = jax.block_until_ready(equiv_linear(x2, alpha2, beta2, bias2))

    assert y2.shape == (N2, M2, F_out2)
    assert jnp.allclose(y2, y2_ref, atol=1e-4, rtol=1e-5), "padded-M mismatch vs reference"

    print("KERNEL_OK")
</pallas_src>

<mosaic_0001>
module attributes {stable_mosaic.version = 11 : i64} {
  func.func @_equiv_linear_kernel(%arg0: i32, %arg1: memref<24x8x32xf32, #tpu.memory_space<vmem>>, %arg2: memref<32x32xf32, #tpu.memory_space<vmem>>, %arg3: memref<32x32xf32, #tpu.memory_space<vmem>>, %arg4: memref<1x32xf32, #tpu.memory_space<vmem>>, %arg5: memref<24x256xf32, #tpu.memory_space<vmem>>) attributes {dimension_semantics = [#tpu.dimension_semantics<parallel>], iteration_bounds = array<i64: 1>, scalar_prefetch = 0 : i64, scratch_operands = 0 : i64, tpu.core_type = #tpu.core_type<tc>, window_params = [{transform_indices = @transform_0, window_bounds = array<i64: 24, 8, 32>}, {pipeline_mode = #tpu.pipeline_mode<synchronous>, transform_indices = @transform_1, window_bounds = array<i64: 32, 32>}, {pipeline_mode = #tpu.pipeline_mode<synchronous>, transform_indices = @transform_2, window_bounds = array<i64: 32, 32>}, {pipeline_mode = #tpu.pipeline_mode<synchronous>, transform_indices = @transform_3, window_bounds = array<i64: 1, 32>}, {transform_indices = @transform_4, window_bounds = array<i64: 24, 256>}]} {
    %c0 = arith.constant 0 : index
    %c0_0 = arith.constant 0 : index
    %c0_1 = arith.constant 0 : index
    %0 = vector.load %arg1[%c0, %c0_0, %c0_1] : memref<24x8x32xf32, #tpu.memory_space<vmem>>, vector<24x8x32xf32>
    %cst = arith.constant dense<0.000000e+00> : vector<24x32xf32>
    %1 = vector.multi_reduction <add>, %0, %cst [1] : vector<24x8x32xf32> to vector<24x32xf32>
    %cst_2 = arith.constant 1.250000e-01 : f32
    %2 = vector.broadcast %cst_2 : f32 to vector<24x32xf32>
    %3 = arith.mulf %1, %2 : vector<24x32xf32>
    %c0_3 = arith.constant 0 : index
    %c0_4 = arith.constant 0 : index
    %4 = vector.load %arg3[%c0_3, %c0_4] : memref<32x32xf32, #tpu.memory_space<vmem>>, vector<32x32xf32>
    %cst_5 = arith.constant dense<0.000000e+00> : vector<24x32xf32>
    %5 = tpu.matmul %3, %4, %cst_5 {dimension_numbers = #tpu.dot_dimension_numbers<[1], [0], [0], [1], [0, 0, 1, 1], [], []>} : vector<24x32xf32>, vector<32x32xf32>, vector<24x32xf32> -> vector<24x32xf32>
    %c0_6 = arith.constant 0 : index
    %c0_7 = arith.constant 0 : index
    %6 = vector.load %arg4[%c0_6, %c0_7] : memref<1x32xf32, #tpu.memory_space<vmem>>, vector<1x32xf32>
    %7 = vector.broadcast %6 : vector<1x32xf32> to vector<24x32xf32>
    %8 = arith.addf %5, %7 : vector<24x32xf32>
    %9 = vector.shape_cast %0 : vector<24x8x32xf32> to vector<192x32xf32>
    %c0_8 = arith.constant 0 : index
    %c0_9 = arith.constant 0 : index
    %10 = vector.load %arg2[%c0_8, %c0_9] : memref<32x32xf32, #tpu.memory_space<vmem>>, vector<32x32xf32>
    %cst_10 = arith.constant dense<0.000000e+00> : vector<192x32xf32>
    %11 = tpu.matmul %9, %10, %cst_10 {dimension_numbers = #tpu.dot_dimension_numbers<[1], [0], [0], [1], [0, 0, 1, 1], [], []>} : vector<192x32xf32>, vector<32x32xf32>, vector<192x32xf32> -> vector<192x32xf32>
    %12 = vector.shape_cast %11 : vector<192x32xf32> to vector<24x8x32xf32>
    %13 = vector.shape_cast %8 : vector<24x32xf32> to vector<24x1x32xf32>
    %14 = vector.broadcast %13 : vector<24x1x32xf32> to vector<24x8x32xf32>
    %15 = arith.addf %12, %14 : vector<24x8x32xf32>
    %16 = vector.shape_cast %15 : vector<24x8x32xf32> to vector<24x256xf32>
    %c0_11 = arith.constant 0 : index
    %c0_12 = arith.constant 0 : index
    %17 = vector.load %arg5[%c0_11, %c0_12] : memref<24x256xf32, #tpu.memory_space<vmem>>, vector<24x256xf32>
    tpu.vector_store %arg5[%c0_11, %c0_12], %16 {strides = array<i32>} : memref<24x256xf32, #tpu.memory_space<vmem>>, vector<24x256xf32>,
    return
  }
  func.func @transform_0(%arg0: i32) -> (i32, i32, i32) {
    %c0_i32 = arith.constant 0 : i32
    %c0_i32_0 = arith.constant 0 : i32
    %c0_i32_1 = arith.constant 0 : i32
    return %arg0, %c0_i32, %c0_i32_0 : i32, i32, i32
  }
  func.func @transform_1(%arg0: i32) -> (i32, i32) {
    %c0_i32 = arith.constant 0 : i32
    %c0_i32_0 = arith.constant 0 : i32
    %c0_i32_1 = arith.constant 0 : i32
    return %c0_i32, %c0_i32_0 : i32, i32
  }
  func.func @transform_2(%arg0: i32) -> (i32, i32) {
    %c0_i32 = arith.constant 0 : i32
    %c0_i32_0 = arith.constant 0 : i32
    %c0_i32_1 = arith.constant 0 : i32
    return %c0_i32, %c0_i32_0 : i32, i32
  }
  func.func @transform_3(%arg0: i32) -> (i32, i32) {
    %c0_i32 = arith.constant 0 : i32
    %c0_i32_0 = arith.constant 0 : i32
    %c0_i32_1 = arith.constant 0 : i32
    return %c0_i32, %c0_i32_0 : i32, i32
  }
  func.func @transform_4(%arg0: i32) -> (i32, i32) {
    %c0_i32 = arith.constant 0 : i32
    %c0_i32_0 = arith.constant 0 : i32
    return %arg0, %c0_i32 : i32, i32
  }
}

</mosaic_0001>

<bundles_post_ra>
// kernel: tpu_custom_call.1
= control target key start
LH: loop header
LB: loop body
LE: loop exit
PB: predicated region body
PF: predicated region fallthrough
CT: control target
= control target key end

     0   :  { %9 = vsyncpa [#allocation3], 0  ;;  %s1797_s0 = inlined_call_operand.hbm [shape: f32[24,8,32], index: 0, kind: input, shape index: {}]   ;;  %s1798_s1 = inlined_call_operand.hbm [shape: f32[32,32], index: 1, kind: input, shape index: {}]   ;;  %s1799_s2 = inlined_call_operand.hbm [shape: f32[32,32], index: 2, kind: input, shape index: {}]   ;;  %s1800_s3 = inlined_call_operand.vmem [shape: f32[1,32], index: 3, kind: input, shape index: {}]   ;;  %s1801_s4 = inlined_call_operand.hbm [shape: f32[24,256], index: 4, kind: output, shape index: {}]  }
   0x1   :  { %10 = vsyncpa [#allocation6], 0 }
   0x2   :  { %11 = vsyncpa [#allocation4], 0  ;;  %s29_s17 = sshll.u32 %s1798_s1, 4  ;;  %s1245_s18 = smov [#allocation5]   ;;  %s30_s17 = int_to_ptr.hbm [resolvable:$true] %s29_s17 }
   0x3   :  { %s31_s19 = sshll.u32 %s1245_s18, 4  ;;  %s16_s22 = sshll.u32 %s1797_s0, 4  ;;  %s32_s19 = int_to_ptr.vmem [resolvable:$true] %s31_s19  ;;  %s17_s22 = int_to_ptr.hbm [resolvable:$true] %s16_s22 }
   0x4   :  { %s1246_s23 = smov 128   ;;  %s1247_s24 = smov 8  }
   0x5   :  { %37 = dma.hbm_to_vmem [thread:$0]  %s30_s17, 512, %s32_s19, [#allocation6], %s1246_s23, %s1246_s23, %s1247_s24  }
   0x6   :  { %s1248_s25 = smov [#allocation2]   ;;  %s42_s29 = sshll.u32 %s1799_s2, 4  ;;  %s43_s29 = int_to_ptr.hbm [resolvable:$true] %s42_s29 }
   0x7   :  { %s18_s26 = sshll.u32 %s1248_s25, 4  ;;  %s1249_s1 = smov [#allocation7]   ;;  %s19_s26 = int_to_ptr.vmem [resolvable:$true] %s18_s26 }
   0x8   :  { %24 = dma.hbm_to_vmem [thread:$0]  %s17_s22, 3072, %s19_s26, [#allocation3], %s1246_s23, %s1246_s23, %s1247_s24  }
   0x9   :  { %s44_s30 = sshll.u32 %s1249_s1, 4  ;;  %s45_s30 = int_to_ptr.vmem [resolvable:$true] %s44_s30 }
   0xa   :  { %50 = dma.hbm_to_vmem [thread:$0]  %s43_s29, 512, %s45_s30, [#allocation6], %s1246_s23, %s1246_s23, %s1247_s24  }
   0xb   :  { %1239 = dma.done.wait [#allocation3], 3072  }
   0xc   :  { %1240 = vsyncadd [#allocation3], 4294964224 }
   0xd   :  { %1241 = dma.done.wait [#allocation6], 1024  }
   0xe   :  { %1242 = vsyncadd [#allocation6], 4294966272  ;;  %v1292_v0 = vld [vmem:[#allocation5 + $0x18] sm:$0xff]  ;;  %v1294_v1 = vld [vmem:[#allocation5 + $0x10] sm:$0xff]  ;;  %vm89_vm0 = vcmask 261120   ;;  %vm314_vm1 = vcmask 1041409  }
   0xf   :  { %1117 = vmatpush.msra.mxu1 %v1292_v0  ;;  %1118 = vmatpush.msra.mxu2 %v1292_v0  ;;  %v1298_v2 = vld [vmem:[#allocation5 + $0x8] sm:$0xff]  ;;  %v68_v3 = vld [vmem:[#allocation2 + $0x18] sm:$0xff]  ;;  %v1300_v4 = vld [vmem:[#allocation2 + $0x40] sm:$0xff]  ;;  %vm316_vm2 = vcmask 1042434   ;;  %vm318_vm3 = vcmask 1043459   ;;  %vm320_vm4 = vcmask 1044484  }
  0x10   :  { %1119 = vmatpush.msra.mxu3 %v1292_v0  ;;  %v1303_v5 = vld [vmem:[#allocation5] sm:$0xff]  ;;  %v111_v6 = vsel %vm89_vm0, %v68_v3, 0.0  ;;  %v1306_v7 = vld [vmem:[#allocation2 + $0x48] sm:$0xff]  ;;  %v75_v8 = vld [vmem:[#allocation2 + $0x50] sm:$0xff]  ;;  %v146_v9 = vsel %vm89_vm0, %v1300_v4, 0.0  ;;  %vm322_vm5 = vcmask 1045509  }
  0x11   :  { %v1310_v10 = vld [vmem:[#allocation2 + $0x80] sm:$0xff]  ;;  %1120 = vmatpush.msra.mxu1 %v1294_v1  ;;  %1121 = vmatpush.msra.mxu2 %v1294_v1  ;;  %v112_v11 = vrot.slane %v111_v6, 4  ;;  %v147_v12 = vrot.slane %v146_v9, 4  ;;  %v153_v13 = vsel %vm89_vm0, %v1306_v7, 0.0  ;;  %v160_v14 = vsel %vm89_vm0, %v75_v8, 0.0  ;;  %v82_v15 = vld [vmem:[#allocation2 + $0x88] sm:$0xff] }
  0x12   :  { %v285_v16 = vld [vmem:[#allocation7 + $0x18] sm:$0xff]  ;;  %1122 = vmatpush.msra.mxu3 %v1294_v1  ;;  %v154_v17 = vrot.slane %v153_v13, 4  ;;  %v161_v18 = vrot.slane %v160_v14, 4  ;;  %v202_v19 = vsel %vm89_vm0, %v1310_v10, 0.0  ;;  %v209_v20 = vsel %vm89_vm0, %v82_v15, 0.0  ;;  %v1321_v21 = vld [vmem:[#allocation2 + $0x20] sm:$0xff] }
  0x13   :  { %360 = vmatpush.msra.mxu0 %v285_v16  ;;  %v1323_v22 = vld [vmem:[#allocation2 + $0x58] sm:$0xff]  ;;  %1123 = vmatpush.msra.mxu1 %v1298_v2  ;;  %v113_v23 = vadd.f32 %v112_v11, %v111_v6  ;;  %v148_v24 = vadd.f32 %v147_v12, %v146_v9  ;;  %v203_v25 = vrot.slane %v202_v19, 4  ;;  %v210_v26 = vrot.slane %v209_v20, 4  ;;  %v284_v27 = vld [vmem:[#allocation7 + $0x10] sm:$0xff]  ;;  %v283_v36 = vld [vmem:[#allocation7 + $0x8] sm:$0xff]  ;;  %s1253_s5 = smov 32  }
  0x14   :  { %1124 = vmatpush.msra.mxu2 %v1298_v2  ;;  %1125 = vmatpush.msra.mxu3 %v1298_v2  ;;  %v155_v28 = vadd.f32 %v154_v17, %v153_v13  ;;  %v162_v29 = vadd.f32 %v161_v18, %v160_v14  ;;  %v118_v30 = vsel %vm89_vm0, %v1321_v21, 0.0  ;;  %v167_v31 = vsel %vm89_vm0, %v1323_v22, 0.0  ;;  %v282_v45 = vld [vmem:[#allocation7] sm:$0xff]  ;;  %v1344_v17 = vld [vmem:[#allocation2 + $0x8] sm:$0xff]  ;;  %s1254_s6 = smov 96   ;;  %s1255_s7 = smov [#allocation8]  }
  0x15   :  { %361 = vmatpush.msra.mxu0 %v284_v27  ;;  %1126 = vmatpush.msra.mxu1 %v1303_v5  ;;  %v114_v32 = vrot.slane %v113_v23, 2  ;;  %v149_v33 = vrot.slane %v148_v24, 2  ;;  %v204_v34 = vadd.f32 %v203_v25, %v202_v19  ;;  %v211_v35 = vadd.f32 %v210_v26, %v209_v20  ;;  %v1339_v9 = vld [vmem:[#allocation2] sm:$0xff]  ;;  %v1355_v25 = vld [vmem:[#allocation2 + $0x10] sm:$0xff]  ;;  %v70_v26 = vld [vmem:[#allocation2 + $0x28] sm:$0xff]  ;;  %s1074_s8 = sshll.u32 %s1255_s7, 4  ;;  %s1075_s8 = int_to_ptr.vmem [resolvable:$true] %s1074_s8 }
  0x16   :  { %1127 = vmatpush.msra.mxu2 %v1303_v5  ;;  %1128 = vmatpush.msra.mxu3 %v1303_v5  ;;  %v156_v37 = vrot.slane %v155_v28, 2  ;;  %v163_v38 = vrot.slane %v162_v29, 2  ;;  %v119_v39 = vrot.slane %v118_v30, 4  ;;  %v168_v40 = vrot.slane %v167_v31, 4  ;;  %v1357_v27 = vld [vmem:[#allocation2 + $0x30] sm:$0xff]  ;;  %s1076_s11 = sshll.u32 %s1801_s4, 4  ;;  %s1077_s11 = int_to_ptr.hbm [resolvable:$true] %s1076_s11 }
  0x17   :  { %1096 = vmatmul.msk.f32.vlgmr.msra.gmra.mxu1 %vm89_vm0, %v68_v3  ;;  %v115_v41 = vadd.f32 %v114_v32, %v113_v23  ;;  %v150_v42 = vadd.f32 %v149_v33, %v148_v24  ;;  %1103 = vmatmul.msk.f32.vlgmr.msra.gmra.mxu2 %vm89_vm0, %v75_v8  ;;  %v205_v43 = vrot.slane %v204_v34, 2  ;;  %v212_v44 = vrot.slane %v211_v35, 2  ;;  %v83_v8 = vld [vmem:[#allocation2 + $0x90] sm:$0xff]  ;;  %s1256_s12 = smov 256   ;;  %s1257_s13 = smov 16  }
  0x18   :  { %1110 = vmatmul.msk.f32.vlgmr.msra.gmra.mxu3 %vm89_vm0, %v82_v15  ;;  %v157_v46 = vadd.f32 %v156_v37, %v155_v28  ;;  %v164_v47 = vadd.f32 %v163_v38, %v162_v29  ;;  %v120_v48 = vadd.f32 %v119_v39, %v118_v30  ;;  %v169_v49 = vadd.f32 %v168_v40, %v167_v31 }
  0x19   :  { %362 = vmatpush.msra.mxu0 %v283_v36  ;;  %v116_v50 = vrot.slane %v115_v41, 1  ;;  %v151_v51 = vrot.slane %v150_v42, 1  ;;  %v206_v52 = vadd.f32 %v205_v43, %v204_v34  ;;  %v213_v53 = vadd.f32 %v212_v44, %v211_v35  ;;  %v1368_v34 = vld [vmem:[#allocation2 + $0x38] sm:$0xff] }
  0x1a   :  { %v158_v54 = vrot.slane %v157_v46, 1  ;;  %v165_v55 = vrot.slane %v164_v47, 1  ;;  %v121_v56 = vrot.slane %v120_v48, 2  ;;  %v170_v57 = vrot.slane %v169_v49, 2 }
  0x1b   :  { %363 = vmatpush.msra.mxu0 %v282_v45  ;;  %v117_v58 = vadd.f32 %v116_v50, %v115_v41  ;;  %v152_v59 = vadd.f32 %v151_v51, %v150_v42  ;;  %v207_v60 = vrot.slane %v206_v52, 1  ;;  %v214_v61 = vrot.slane %v213_v53, 1  ;;  %v77_v50 = vld [vmem:[#allocation2 + $0x60] sm:$0xff]  ;;  %v84_v51 = vld [vmem:[#allocation2 + $0x98] sm:$0xff] }
  0x1c   :  { %v159_v62 = vadd.f32 %v158_v54, %v157_v46  ;;  %v166_v63 = vadd.f32 %v165_v55, %v164_v47  ;;  %v122_v3 = vadd.f32 %v121_v56, %v120_v48  ;;  %v171_v6 = vadd.f32 %v170_v57, %v169_v49 }
  0x1d   :  { %462 = vmatpush.msrb.mxu0 %v1292_v0  ;;  %v266_v11 = vmul.f32 0.125, %v152_v59  ;;  %v208_v12 = vadd.f32 %v207_v60, %v206_v52  ;;  %v215_v13 = vadd.f32 %v214_v61, %v213_v53  ;;  %v216_v20 = vsel %vm89_vm0, %v83_v8, 0.0 }
  0x1e   :  { %v267_v14 = vmul.f32 0.125, %v159_v62  ;;  %v268_v15 = vmul.f32 0.125, %v166_v63  ;;  %v123_v16 = vrot.slane %v122_v3, 1  ;;  %v172_v0 = vrot.slane %v171_v6, 1 }
  0x1f   :  { %463 = vmatpush.msrb.mxu0 %v1294_v1  ;;  %1097 = vmatmul.msk.f32.gmra.mxu1 %vm89_vm0, %v1321_v21  ;;  %v274_v18 = vmul.f32 0.125, %v208_v12  ;;  %v275_v19 = vmul.f32 0.125, %v215_v13  ;;  %v90_v1 = vsel %vm89_vm0, %v1339_v9, 0.0  ;;  %v1352_v23 = vmul.f32 0.125, %v117_v58 }
  0x20   :  { %1104 = vmatmul.msk.f32.gmra.mxu2 %vm89_vm0, %v1323_v22  ;;  %1111 = vmatmul.msk.f32.gmra.mxu3 %vm89_vm0, %v83_v8  ;;  %v328_v21 = vsel %vm314_vm1, %v267_v14, %v266_v11  ;;  %v217_v24 = vrot.slane %v216_v20, 4  ;;  %v124_v22 = vadd.f32 %v123_v16, %v122_v3  ;;  %v173_v28 = vadd.f32 %v172_v0, %v171_v6 }
  0x21   :  { %464 = vmatpush.msrb.mxu0 %v1298_v2  ;;  %v91_v29 = vrot.slane %v90_v1, 4  ;;  %v97_v30 = vsel %vm89_vm0, %v1344_v17, 0.0  ;;  %v1363_v31 = vsel %vm316_vm2, %v268_v15, %v328_v21  ;;  %v1366_v32 = vsel %vm314_vm1, %v275_v19, %v274_v18 }
  0x22   :  { %v218_v33 = vadd.f32 %v217_v24, %v216_v20  ;;  %v98_v35 = vrot.slane %v97_v30, 4  ;;  %v104_v2 = vsel %vm89_vm0, %v1355_v25, 0.0  ;;  %v125_v37 = vsel %vm89_vm0, %v70_v26, 0.0 }
  0x23   :  { %465 = vmatpush.msrb.mxu0 %v1303_v5  ;;  %v92_v36 = vadd.f32 %v91_v29, %v90_v1  ;;  %v132_v38 = vsel %vm89_vm0, %v1357_v27, 0.0  ;;  %v105_v41 = vrot.slane %v104_v2, 4  ;;  %v126_v42 = vrot.slane %v125_v37, 4 }
  0x24   :  { %v219_v39 = vrot.slane %v218_v33, 2  ;;  %v99_v40 = vadd.f32 %v98_v35, %v97_v30  ;;  %v1376_v43 = vmul.f32 0.125, %v124_v22  ;;  %v133_v45 = vrot.slane %v132_v38, 4  ;;  %v85_v22 = vld [vmem:[#allocation2 + $0xa0] sm:$0xff]  ;;  %v79_v35 = vld [vmem:[#allocation2 + $0x70] sm:$0xff] }
  0x25   :  { %v93_v44 = vrot.slane %v92_v36, 2  ;;  %v139_v5 = vsel %vm89_vm0, %v1368_v34, 0.0  ;;  %v106_v48 = vadd.f32 %v105_v41, %v104_v2  ;;  %v127_v49 = vadd.f32 %v126_v42, %v125_v37  ;;  %v1394_v41 = vld [vmem:[#allocation2 + $0x78] sm:$0xff] }
  0x26   :  { %v220_v46 = vadd.f32 %v219_v39, %v218_v33  ;;  %v100_v47 = vrot.slane %v99_v40, 2  ;;  %v1381_v52 = vmul.f32 0.125, %v173_v28  ;;  %v134_v54 = vadd.f32 %v133_v45, %v132_v38 }
  0x27   :  { %1098 = vmatmul.msk.f32.gmra.mxu1 %vm89_vm0, %v70_v26  ;;  %v94_v53 = vadd.f32 %v93_v44, %v92_v36  ;;  %v140_v55 = vrot.slane %v139_v5, 4  ;;  %v107_v58 = vrot.slane %v106_v48, 2  ;;  %v128_v59 = vrot.slane %v127_v49, 2  ;;  %v78_v26 = vld [vmem:[#allocation2 + $0x68] sm:$0xff] }
  0x28   :  { %1105 = vmatmul.msk.f32.gmra.mxu2 %vm89_vm0, %v77_v50  ;;  %1112 = vmatmul.msk.f32.gmra.mxu3 %vm89_vm0, %v84_v51  ;;  %v221_v56 = vrot.slane %v220_v46, 1  ;;  %v101_v57 = vadd.f32 %v100_v47, %v99_v40  ;;  %v135_v61 = vrot.slane %v134_v54, 2  ;;  %vm324_vm6 = vcmask 1046534  }
  0x29   :  { %v95_v60 = vrot.slane %v94_v53, 1  ;;  %v141_v62 = vadd.f32 %v140_v55, %v139_v5  ;;  %v108_v6 = vadd.f32 %v107_v58, %v106_v48  ;;  %v129_v8 = vadd.f32 %v128_v59, %v127_v49 }
  0x2a   :  { %v222_v63 = vadd.f32 %v221_v56, %v220_v46  ;;  %v102_v3 = vrot.slane %v101_v57, 1  ;;  %v136_v12 = vadd.f32 %v135_v61, %v134_v54  ;;  %vm326_vm7 = vcmask 1047559  }
  0x2b   :  { %v96_v11 = vadd.f32 %v95_v60, %v94_v53  ;;  %v142_v13 = vrot.slane %v141_v62, 2  ;;  %v109_v15 = vrot.slane %v108_v6, 1  ;;  %v130_v16 = vrot.slane %v129_v8, 1  ;;  %v86_v60 = vld [vmem:[#allocation2 + $0xa8] sm:$0xff] }
  0x2c   :  { %v103_v14 = vadd.f32 %v102_v3, %v101_v57  ;;  %v1385_v0 = vmul.f32 0.125, %v222_v63  ;;  %v137_v18 = vrot.slane %v136_v12, 1  ;;  %v174_v30 = vsel %vm89_vm0, %v77_v50, 0.0 }
  0x2d   :  { %v143_v19 = vadd.f32 %v142_v13, %v141_v62  ;;  %v258_v20 = vmul.f32 0.125, %v96_v11  ;;  %v110_v1 = vadd.f32 %v109_v15, %v108_v6  ;;  %v131_v21 = vadd.f32 %v130_v16, %v129_v8  ;;  %v87_v11 = vld [vmem:[#allocation2 + $0xb0] sm:$0xff] }
  0x2e   :  { %v259_v24 = vmul.f32 0.125, %v103_v14  ;;  %v138_v28 = vadd.f32 %v137_v18, %v136_v12  ;;  %v223_v33 = vsel %vm89_vm0, %v84_v51, 0.0  ;;  %v175_v38 = vrot.slane %v174_v30, 4 }
  0x2f   :  { %1099 = vmatmul.msk.f32.gmra.mxu1 %vm89_vm0, %v1357_v27  ;;  %v144_v29 = vrot.slane %v143_v19, 1  ;;  %v260_v36 = vmul.f32 0.125, %v110_v1  ;;  %v263_v2 = vmul.f32 0.125, %v131_v21  ;;  %v224_v27 = vrot.slane %v223_v33, 4 }
  0x30   :  { %1106 = vmatmul.msk.f32.gmra.mxu2 %vm89_vm0, %v78_v26  ;;  %1113 = vmatmul.msk.f32.gmra.mxu3 %vm89_vm0, %v85_v22  ;;  %v315_v37 = vsel %vm314_vm1, %v259_v24, %v258_v20  ;;  %v264_v40 = vmul.f32 0.125, %v138_v28  ;;  %v181_v42 = vsel %vm89_vm0, %v78_v26, 0.0  ;;  %v176_v45 = vadd.f32 %v175_v38, %v174_v30 }
  0x31   :  { %v145_v39 = vadd.f32 %v144_v29, %v143_v19  ;;  %v317_v44 = vsel %vm316_vm2, %v260_v36, %v315_v37  ;;  %v182_v5 = vrot.slane %v181_v42, 4  ;;  %v188_v46 = vsel %vm89_vm0, %v79_v35, 0.0 }
  0x32   :  { %v319_v48 = vsel %vm318_vm3, %v1352_v23, %v317_v44  ;;  %v225_v49 = vadd.f32 %v224_v27, %v223_v33  ;;  %v189_v50 = vrot.slane %v188_v46, 4  ;;  %v177_v53 = vrot.slane %v176_v45, 2  ;;  %v88_v33 = vld [vmem:[#allocation2 + $0xb8] sm:$0xff] }
  0x33   :  { %v265_v47 = vmul.f32 0.125, %v145_v39  ;;  %v321_v51 = vsel %vm320_vm4, %v1376_v43, %v319_v48  ;;  %v183_v54 = vadd.f32 %v182_v5, %v181_v42  ;;  %v195_v55 = vsel %vm89_vm0, %v1394_v41, 0.0 }
  0x34   :  { %v323_v56 = vsel %vm322_vm5, %v263_v2, %v321_v51  ;;  %v226_v57 = vrot.slane %v225_v49, 2  ;;  %v190_v58 = vadd.f32 %v189_v50, %v188_v46  ;;  %v196_v59 = vrot.slane %v195_v55, 4 }
  0x35   :  { %v325_v61 = vsel %vm324_vm6, %v264_v40, %v323_v56  ;;  %v178_v62 = vadd.f32 %v177_v53, %v176_v45  ;;  %v184_v23 = vrot.slane %v183_v54, 2  ;;  %v330_v63 = vsel %vm318_vm3, %v1381_v52, %v1363_v31 }
  0x36   :  { %v327_v43 = vsel %vm326_vm7, %v265_v47, %v325_v61  ;;  %v227_v3 = vadd.f32 %v226_v57, %v225_v49  ;;  %v191_v6 = vrot.slane %v190_v58, 2  ;;  %v197_v8 = vadd.f32 %v196_v59, %v195_v55 }
  0x37   :  { %1100 = vmatmul.msk.f32.gmra.mxu1 %vm89_vm0, %v1368_v34  ;;  %1090 = vmatmul.msk.f32.vlgmr.msra.gmra.mxu0 %vm89_vm0, %v327_v43  ;;  %v179_v12 = vrot.slane %v178_v62, 1  ;;  %v185_v13 = vadd.f32 %v184_v23, %v183_v54  ;;  %v230_v14 = vsel %vm89_vm0, %v85_v22, 0.0  ;;  %v237_v31 = vsel %vm89_vm0, %v86_v60, 0.0 }
  0x38   :  { %1107 = vmatmul.msk.f32.gmra.mxu2 %vm89_vm0, %v79_v35  ;;  %1114 = vmatmul.msk.f32.gmra.mxu3 %vm89_vm0, %v86_v60  ;;  %v228_v52 = vrot.slane %v227_v3, 1  ;;  %v192_v34 = vadd.f32 %v191_v6, %v190_v58  ;;  %v198_v15 = vrot.slane %v197_v8, 2  ;;  %v231_v16 = vrot.slane %v230_v14, 4 }
  0x39   :  { %v180_v18 = vadd.f32 %v179_v12, %v178_v62  ;;  %v186_v19 = vrot.slane %v185_v13, 1  ;;  %v238_v20 = vrot.slane %v237_v31, 4  ;;  %v244_v1 = vsel %vm89_vm0, %v87_v11, 0.0 }
  0x3a   :  { %v229_v21 = vadd.f32 %v228_v52, %v227_v3  ;;  %v193_v24 = vrot.slane %v192_v34, 1  ;;  %v199_v26 = vadd.f32 %v198_v15, %v197_v8  ;;  %v232_v28 = vadd.f32 %v231_v16, %v230_v14 }
  0x3b   :  { %v270_v29 = vmul.f32 0.125, %v180_v18  ;;  %v187_v30 = vadd.f32 %v186_v19, %v185_v13  ;;  %v239_v35 = vadd.f32 %v238_v20, %v237_v31  ;;  %v245_v22 = vrot.slane %v244_v1, 4 }
  0x3c   :  { %v277_v36 = vmul.f32 0.125, %v229_v21  ;;  %v194_v2 = vadd.f32 %v193_v24, %v192_v34  ;;  %v200_v37 = vrot.slane %v199_v26, 1  ;;  %v233_v38 = vrot.slane %v232_v28, 2 }
  0x3d   :  { %v271_v39 = vmul.f32 0.125, %v187_v30  ;;  %v331_v40 = vsel %vm320_vm4, %v270_v29, %v330_v63  ;;  %v240_v27 = vrot.slane %v239_v35, 2  ;;  %v246_v42 = vadd.f32 %v245_v22, %v244_v1 }
  0x3e   :  { %v201_v44 = vadd.f32 %v200_v37, %v199_v26  ;;  %v272_v45 = vmul.f32 0.125, %v194_v2  ;;  %v234_v5 = vadd.f32 %v233_v38, %v232_v28  ;;  %v251_v46 = vsel %vm89_vm0, %v88_v33, 0.0 }
  0x3f   :  { %1101 = vmatmul.msk.f32.gmra.mxu1 %vm89_vm0, %v1300_v4  ;;  %v332_v47 = vsel %vm322_vm5, %v271_v39, %v331_v40  ;;  %v241_v48 = vadd.f32 %v240_v27, %v239_v35  ;;  %v247_v49 = vrot.slane %v246_v42, 2  ;;  %v252_v50 = vrot.slane %v251_v46, 4 }
  0x40   :  { %1108 = vmatmul.msk.f32.gmra.mxu2 %vm89_vm0, %v1394_v41  ;;  %1115 = vmatmul.msk.f32.gmra.mxu3 %vm89_vm0, %v87_v11  ;;  %v336_v51 = vsel %vm316_vm2, %v1385_v0, %v1366_v32  ;;  %v273_v4 = vmul.f32 0.125, %v201_v44  ;;  %v333_v53 = vsel %vm324_vm6, %v272_v45, %v332_v47  ;;  %v235_v54 = vrot.slane %v234_v5, 1 }
  0x41   :  { %v242_v55 = vrot.slane %v241_v48, 1  ;;  %v248_v56 = vadd.f32 %v247_v49, %v246_v42  ;;  %v253_v57 = vadd.f32 %v252_v50, %v251_v46  ;;  %v337_v62 = vsel %vm318_vm3, %v277_v36, %v336_v51 }
  0x42   :  { %v334_v41 = vsel %vm326_vm7, %v273_v4, %v333_v53  ;;  %v236_v58 = vadd.f32 %v235_v54, %v234_v5  ;;  %v1250_v37 = vmov 1983009808   ;;  %v1251_v42 = vmov 1934713408  }
  0x43   :  { %1091 = vmatmul.msk.f32.gmra.mxu0 %vm89_vm0, %v334_v41  ;;  %v243_v59 = vadd.f32 %v242_v55, %v241_v48  ;;  %v249_v60 = vrot.slane %v248_v56, 1  ;;  %v254_v61 = vrot.slane %v253_v57, 2  ;;  %v641_v38 = vunpack.c.l.s4 %v1250_v37 }
  0x44   :  { %v278_v23 = vmul.f32 0.125, %v236_v58  ;;  %v689_v44 = vunpack.c.l.s4 %v1251_v42  ;;  %vm636_vm8 = vcmask 1047556   ;;  %vm1047_vm9 = vcmask 523264  }
  0x45   :  { %v250_v63 = vadd.f32 %v249_v60, %v248_v56  ;;  %v255_v32 = vadd.f32 %v254_v61, %v253_v57  ;;  %v279_v0 = vmul.f32 0.125, %v243_v59  ;;  %v1481_v49 = vunpack.c.0.s8 %v641_v38 }
  0x46   :  { %v338_v43 = vsel %vm320_vm4, %v278_v23, %v337_v62  ;;  %v1488_v55 = vunpack.c.0.s8 %v689_v44  ;;  %vm1051_vm10 = vcmask 785408  }
  0x47   :  { %1102 = vmatmul.msk.f32.gmra.mxu1 %vm89_vm0, %v1306_v7  ;;  %v256_v3 = vrot.slane %v255_v32, 1  ;;  %v280_v6 = vmul.f32 0.125, %v250_v63  ;;  %v339_v8 = vsel %vm322_vm5, %v279_v0, %v338_v43 }
  0x48   :  { %1109 = vmatmul.msk.f32.gmra.mxu2 %vm89_vm0, %v1310_v10  ;;  %1116 = vmatmul.msk.f32.gmra.mxu3 %vm89_vm0, %v88_v33 }
  0x49   :  { %v257_v11 = vadd.f32 %v256_v3, %v255_v32  ;;  %v340_v12 = vsel %vm324_vm6, %v280_v6, %v339_v8 }
  0x4b   :  { %v281_v13 = vmul.f32 0.125, %v257_v11 }
  0x4d   :  { %v341_v14 = vsel %vm326_vm7, %v281_v13, %v340_v12 }
  0x4e   :  { %1092 = vmatmul.msk.f32.gmra.mxu0 %vm89_vm0, %v341_v14 }
  0x56   :  { %1093 = vmatmul.msk.f32.vlgmr.msrb.gmra.mxu0 %vm89_vm0, %v1339_v9 }
  0x5e   :  { %1094 = vmatmul.msk.f32.gmra.mxu0 %vm89_vm0, %v1344_v17  ;;  %v1467_v17 = vld [vmem:[%s1800_s3] ss:$0 sm:$0xff]  ;;  %s1252_s3 = smov 64  }
  0x66   :  { %1095 = vmatmul.msk.f32.gmra.mxu0 %vm89_vm0, %v1355_v25 }
  0x94   :  { %v1450_v7 = vpop.f32.mrf.mxu1 }
  0x9a   :  { %v1452_v10 = vpop.f32.mrf.mxu2 }
  0x9b   :  { %v1454_v31 = vpop.f32.mrf.mxu3 }
  0x9c   :  { %v479_v52 = vpop.f32.mrf.mxu1 }
  0xa3   :  { %v1456_v34 = vpop.f32.mrf.mxu2  ;;  %v1458_v16 = vpop.f32.mrf.mxu3 }
  0xa4   :  { %v482_v15 = vpop.f32.mrf.mxu1 }
  0xab   :  { %v1460_v18 = vpop.f32.mrf.mxu2  ;;  %v1462_v19 = vpop.f32.mrf.mxu3 }
  0xac   :  { %v485_v9 = vpop.f32.mrf.mxu1 }
  0xb3   :  { %v1469_v25 = vpop.f32.mrf.mxu2  ;;  %v1477_v29 = vpop.f32.mrf.mxu3 }
  0xb4   :  { %v488_v20 = vpop.f32.mrf.mxu1  ;;  %v365_v1 = vpop.f32.mrf.mxu0 }
  0xb5   :  { %v1472_v21 = vadd.f32 %v1467_v17, %v365_v1 }
  0xb7   :  { %v546_v24 = vrot.slane %v1472_v21, 5  ;;  %v545_v26 = vrot.slane %v1472_v21, 4  ;;  %v547_v28 = vrot.slane %v1472_v21, 6  ;;  %v548_v30 = vrot.slane %v1472_v21, 7 }
  0xb8   :  { %v544_v47 = vrot.slane %v1472_v21, 3  ;;  %v563_v53 = vperm.slane %v1472_v21, 0  ;;  %v542_v54 = vrot.slane %v1472_v21, 1 }
  0xb9   :  { %v567_v33 = vperm.slane %v545_v26, 0  ;;  %v568_v35 = vperm.slane %v546_v24, 0  ;;  %v569_v22 = vperm.slane %v547_v28, 0  ;;  %v570_v36 = vperm.slane %v548_v30, 0 }
  0xba   :  { %v566_v58 = vperm.slane %v544_v47, 0  ;;  %v1509_v38 = vperm.slane %v542_v54, 0 }
  0xbb   :  { %v615_v2 = vadd.f32 %v567_v33, %v479_v52  ;;  %v618_v39 = vadd.f32 %v570_v36, %v488_v20  ;;  %v509_v40 = vpop.f32.mrf.mxu2  ;;  %v616_v45 = vadd.f32 %v568_v35, %v482_v15  ;;  %v617_v5 = vadd.f32 %v569_v22, %v485_v9  ;;  %v1484_v4 = vpop.f32.mrf.mxu3 }
  0xbc   :  { %v491_v27 = vpop.f32.mrf.mxu1  ;;  %v1494_v13 = vadd.f32 %v566_v58, %v1450_v7  ;;  %v543_v52 = vrot.slane %v1472_v21, 2 }
  0xbd   :  { %v662_v46 = vrot.slane %v615_v2, 4  ;;  %v672_v50 = vrot.slane %v618_v39, 4  ;;  %v674_v56 = vrot.slane %v616_v45, 4  ;;  %v660_v57 = vrot.slane %v617_v5, 4 }
  0xbf   :  { %v663_v41 = vsel %vm636_vm8, %v617_v5, %v662_v46  ;;  %v673_v23 = vsel %vm636_vm8, %v672_v50, %v616_v45  ;;  %v675_v11 = vsel %vm636_vm8, %v618_v39, %v674_v56  ;;  %v661_v26 = vsel %vm636_vm8, %v660_v57, %v615_v2 }
  0xc0   :  { %v368_v48 = vpop.f32.mrf.mxu0  ;;  %v1499_v28 = vperm.slane %v663_v41, %v1481_v49  ;;  %v1502_v30 = vperm.slane %v673_v23, %v1481_v49  ;;  %v1505_v7 = vperm.slane %v675_v11, %v1481_v49  ;;  %v648_v45 = vrot.slane %v1494_v13, 4 }
  0xc1   :  { %v369_v51 = vadd.f32 %v1467_v17, %v368_v48  ;;  %v1514_v5 = vperm.slane %v543_v52, 0 }
  0xc2   :  { %v708_v47 = vrot.slane %v1502_v30, 4 }
  0xc3   :  { %v553_v59 = vrot.slane %v369_v51, 5  ;;  %v552_v60 = vrot.slane %v369_v51, 4  ;;  %v554_v61 = vrot.slane %v369_v51, 6  ;;  %v550_v62 = vrot.slane %v369_v51, 2  ;;  %v512_v12 = vpop.f32.mrf.mxu2  ;;  %v533_v44 = vpop.f32.mrf.mxu3 }
  0xc4   :  { %v555_v63 = vrot.slane %v369_v51, 7  ;;  %v549_v32 = vrot.slane %v369_v51, 1  ;;  %v551_v0 = vrot.slane %v369_v51, 3  ;;  %v571_v6 = vperm.slane %v369_v51, 0  ;;  %v494_v24 = vpop.f32.mrf.mxu1 }
  0xc5   :  { %v575_v43 = vperm.slane %v552_v60, 0  ;;  %v577_v3 = vperm.slane %v554_v61, 0  ;;  %v573_v8 = vperm.slane %v550_v62, 0  ;;  %v576_v15 = vperm.slane %v553_v59, 0 }
  0xc6   :  { %v574_v14 = vperm.slane %v551_v0, 0  ;;  %v619_v20 = vadd.f32 %v571_v6, %v491_v27  ;;  %v578_v1 = vperm.slane %v555_v63, 0  ;;  %v572_v33 = vperm.slane %v549_v32, 0 }
  0xc7   :  { %v625_v9 = vadd.f32 %v577_v3, %v509_v40  ;;  %v623_v35 = vadd.f32 %v575_v43, %v1460_v18  ;;  %v621_v22 = vadd.f32 %v573_v8, %v1452_v10  ;;  %v624_v40 = vadd.f32 %v576_v15, %v1469_v25 }
  0xc8   :  { %v626_v36 = vadd.f32 %v578_v1, %v512_v12  ;;  %v620_v39 = vadd.f32 %v572_v33, %v494_v24  ;;  %v622_v2 = vadd.f32 %v574_v14, %v1456_v34  ;;  %v750_v42 = vrot.slane %v619_v20, 4 }
  0xc9   :  { %v772_v37 = vrot.slane %v625_v9, 4  ;;  %v1517_v18 = vperm.slane %v661_v26, %v1481_v49  ;;  %v722_v10 = vrot.slane %v1499_v28, 4  ;;  %v720_v34 = vrot.slane %v1505_v7, 4 }
  0xca   :  { %v774_v25 = vrot.slane %v623_v35, 4  ;;  %v748_v48 = vrot.slane %v621_v22, 4  ;;  %v784_v50 = vrot.slane %v626_v36, 4  ;;  %v760_v56 = vrot.slane %v622_v2, 4 }
  0xcb   :  { %v371_v27 = vpop.f32.mrf.mxu0  ;;  %v773_v51 = vsel %vm636_vm8, %v772_v37, %v623_v35  ;;  %v762_v57 = vrot.slane %v620_v39, 4  ;;  %v786_v41 = vrot.slane %v624_v40, 4  ;;  %v751_v58 = vsel %vm636_vm8, %v621_v22, %v750_v42 }
  0xcc   :  { %v1521_v46 = vadd.f32 %v1467_v17, %v371_v27  ;;  %v775_v60 = vsel %vm636_vm8, %v625_v9, %v774_v25  ;;  %v749_v61 = vsel %vm636_vm8, %v748_v48, %v619_v20  ;;  %v761_v62 = vsel %vm636_vm8, %v760_v56, %v620_v39  ;;  %v515_v9 = vpop.f32.mrf.mxu2  ;;  %v536_v39 = vpop.f32.mrf.mxu3 }
  0xcd   :  { %v779_v63 = vperm.slane %v773_v51, %v1481_v49  ;;  %v785_v32 = vsel %vm636_vm8, %v784_v50, %v624_v40  ;;  %v1537_v6 = vperm.slane %v751_v58, %v1481_v49  ;;  %v787_v8 = vsel %vm636_vm8, %v626_v36, %v786_v41 }
  0xce   :  { %v560_v54 = vrot.slane %v1521_v46, 5  ;;  %v559_v59 = vrot.slane %v1521_v46, 4  ;;  %v561_v17 = vrot.slane %v1521_v46, 6  ;;  %v557_v23 = vrot.slane %v1521_v46, 2 }
  0xcf   :  { %v763_v11 = vsel %vm636_vm8, %v622_v2, %v762_v57  ;;  %v755_v14 = vperm.slane %v749_v61, %v1481_v49  ;;  %v767_v15 = vperm.slane %v761_v62, %v1481_v49  ;;  %v562_v20 = vrot.slane %v1521_v46, 7 }
  0xd0   :  { %v583_v0 = vperm.slane %v559_v59, 0  ;;  %v585_v43 = vperm.slane %v561_v17, 0  ;;  %v584_v3 = vperm.slane %v560_v54, 0  ;;  %v1545_v1 = vperm.slane %v775_v60, %v1481_v49 }
  0xd1   :  { %v791_v24 = vperm.slane %v785_v32, %v1481_v49  ;;  %v579_v26 = vperm.slane %v1521_v46, 0  ;;  %v581_v33 = vperm.slane %v557_v23, 0  ;;  %v822_v35 = vrot.slane %v779_v63, 4 }
  0xd2   :  { %v633_v52 = vadd.f32 %v585_v43, %v533_v44  ;;  %v795_v22 = vperm.slane %v787_v8, %v1481_v49  ;;  %v631_v36 = vadd.f32 %v583_v0, %v1477_v29  ;;  %v771_v37 = vperm.slane %v763_v11, %v1481_v49 }
  0xd3   :  { %v467_v12 = vpop.f32.mrf.mxu0  ;;  %v632_v2 = vadd.f32 %v584_v3, %v1484_v4  ;;  %v627_v27 = vadd.f32 %v579_v26, %v515_v9  ;;  %v586_v42 = vperm.slane %v562_v20, 0  ;;  %v798_v44 = vrot.slane %v755_v14, 4 }
  0xd4   :  { %v1555_v40 = vadd.f32 %v563_v53, %v467_v12  ;;  %v810_v25 = vrot.slane %v1537_v6, 4  ;;  %v884_v48 = vrot.slane %v633_v52, 4  ;;  %v796_v50 = vrot.slane %v767_v15, 4 }
  0xd5   :  { %v834_v51 = vrot.slane %v1545_v1, 4  ;;  %v629_v29 = vadd.f32 %v581_v33, %v1458_v16  ;;  %v634_v54 = vadd.f32 %v586_v42, %v536_v39  ;;  %v823_v56 = vsel %vm636_vm8, %v791_v24, %v822_v35 }
  0xd6   :  { %v820_v57 = vrot.slane %v791_v24, 4  ;;  %v886_v4 = vrot.slane %v631_v36, 4  ;;  %v808_v41 = vrot.slane %v771_v37, 4  ;;  %v799_v21 = vsel %vm636_vm8, %v767_v15, %v798_v44 }
  0xd7   :  { %v898_v53 = vrot.slane %v632_v2, 4  ;;  %v638_v58 = vrot.slane %v1555_v40, 4  ;;  %v832_v59 = vrot.slane %v795_v22, 4  ;;  %v862_v17 = vrot.slane %v627_v27, 4 }
  0xd8   :  { %v885_v60 = vsel %vm636_vm8, %v884_v48, %v631_v36  ;;  %v887_v61 = vsel %vm636_vm8, %v633_v52, %v886_v4  ;;  %v1566_v16 = vperm.slane %v823_v56, %v1488_v55  ;;  %v797_v23 = vsel %vm636_vm8, %v796_v50, %v755_v14 }
  0xd9   :  { %v860_v0 = vrot.slane %v629_v29, 4  ;;  %v896_v43 = vrot.slane %v634_v54, 4  ;;  %v1571_v3 = vperm.slane %v799_v21, %v1488_v55  ;;  %v1575_v11 = vperm.slane %v797_v23, %v1488_v55 }
  0xda   :  { %v848_v8 = vrot.slane %v1566_v16, 4  ;;  %v821_v12 = vsel %vm636_vm8, %v820_v57, %v779_v63  ;;  %v809_v52 = vsel %vm636_vm8, %v808_v41, %v1537_v6  ;;  %v1581_v15 = vperm.slane %v885_v60, %v1481_v49 }
  0xdb   :  { %v470_v62 = vpop.f32.mrf.mxu0  ;;  %v899_v9 = vsel %vm636_vm8, %v634_v54, %v898_v53  ;;  %v1588_v24 = vperm.slane %v821_v12, %v1488_v55  ;;  %v846_v26 = vrot.slane %v1575_v11, 4  ;;  %v1592_v63 = vperm.slane %v809_v52, %v1488_v55 }
  0xdc   :  { %v612_v32 = vadd.f32 %v1509_v38, %v470_v62  ;;  %v861_v38 = vsel %vm636_vm8, %v860_v0, %v627_v27  ;;  %v849_v20 = vsel %vm636_vm8, %v848_v8, %v1571_v3  ;;  %v863_v33 = vsel %vm636_vm8, %v629_v29, %v862_v17 }
  0xdd   :  { %989 = vrot.lane.b32.xlu1 %v849_v20, %s1252_s3  ;;  %v833_v35 = vsel %vm636_vm8, %v832_v59, %v1545_v1  ;;  %v811_v36 = vsel %vm636_vm8, %v771_v37, %v810_v25  ;;  %v1602_v39 = vperm.slane %v861_v38, %v1481_v49  ;;  %v897_v27 = vsel %vm636_vm8, %v896_v43, %v632_v2 }
  0xde   :  { %v650_v14 = vrot.slane %v612_v32, 4  ;;  %v1606_v42 = vperm.slane %v899_v9, %v1481_v49  ;;  %v847_v44 = vsel %vm636_vm8, %v1588_v24, %v846_v26  ;;  %v1613_v1 = vperm.slane %v833_v35, %v1488_v55 }
  0xdf   :  { %977 = vrot.lane.b32.xlu0 %v847_v44, %s1253_s5  ;;  %v854_v37 = vrot.slane %v1592_v63, 4  ;;  %v835_v25 = vsel %vm636_vm8, %v795_v22, %v834_v51  ;;  %v1618_v2 = vperm.slane %v887_v61, %v1481_v49  ;;  %v1621_v50 = vperm.slane %v863_v33, %v1481_v49 }
  0xe0   :  { %v651_v6 = vsel %vm636_vm8, %v1494_v13, %v650_v14  ;;  %v1624_v54 = vperm.slane %v811_v36, %v1488_v55  ;;  %v1627_v56 = vperm.slane %v835_v25, %v1488_v55  ;;  %v934_v57 = vrot.slane %v1581_v15, 4 }
  0xe1   :  { %v659_v48 = vperm.slane %v651_v6, %v1481_v49  ;;  %v855_v22 = vsel %vm636_vm8, %v1613_v1, %v854_v37  ;;  %v723_v51 = vsel %vm636_vm8, %v1505_v7, %v722_v10  ;;  %v910_v41 = vrot.slane %v1602_v39, 4 }
  0xe2   :  { %v903_v21 = vperm.slane %v897_v27, %v1481_v49  ;;  %1013 = vrot.lane.b32.xlu2 %v855_v22, %s1253_s5  ;;  %v856_v53 = vrot.slane %v1627_v56, 4  ;;  %v556_v59 = vrot.slane %v1521_v46, 1  ;;  %v558_v61 = vrot.slane %v1521_v46, 3 }
  0xe3   :  { %v473_v29 = vpop.f32.mrf.mxu0  ;;  %v696_v17 = vrot.slane %v659_v48, 4  ;;  %v1649_v23 = vperm.slane %v723_v51, %v1488_v55  ;;  %v649_v43 = vsel %vm636_vm8, %v648_v45, %v612_v32  ;;  %v721_v46 = vsel %vm636_vm8, %v720_v34, %v1499_v28 }
  0xe4   :  { %v613_v4 = vadd.f32 %v1514_v5, %v473_v29  ;;  %v944_v5 = vrot.slane %v1606_v42, 4  ;;  %v857_v10 = vsel %vm636_vm8, %v856_v53, %v1624_v54  ;;  %v580_v0 = vperm.slane %v556_v59, 0 }
  0xe5   :  { %1025 = vrot.lane.b32.xlu1 %v857_v10, %s1252_s3  ;;  %v582_v8 = vperm.slane %v558_v61, 0  ;;  %v932_v9 = vrot.slane %v903_v21, 4  ;;  %v935_v32 = vsel %vm636_vm8, %v903_v21, %v934_v57  ;;  %v1668_v7 = vperm.slane %v649_v43, %v1481_v49 }
  0xe6   :  { %v639_v60 = vsel %vm636_vm8, %v613_v4, %v638_v58  ;;  %v850_v58 = vrot.slane %v1571_v3, 4  ;;  %v635_v12 = vrot.slane %v613_v4, 4  ;;  %v628_v38 = vadd.f32 %v580_v0, %v1454_v31 }
  0xe7   :  { %v647_v62 = vperm.slane %v639_v60, %v1481_v49  ;;  %v630_v45 = vadd.f32 %v582_v8, %v1462_v19  ;;  %v744_v34 = vrot.slane %v1649_v23, 4  ;;  %v727_v31 = vperm.slane %v721_v46, %v1488_v55 }
  0xe8   :  { %v874_v3 = vrot.slane %v628_v38, 4  ;;  %v637_v19 = vsel %vm636_vm8, %v635_v12, %v1555_v40  ;;  %v851_v33 = vsel %vm636_vm8, %v1566_v16, %v850_v58  ;;  %v1683_v36 = vperm.slane %v935_v32, %v1488_v55 }
  0xe9   :  { %v698_v52 = vrot.slane %v647_v62, 4  ;;  %v697_v14 = vsel %vm636_vm8, %v696_v17, %v647_v62  ;;  %v872_v6 = vrot.slane %v630_v45, 4  ;;  %v710_v25 = vrot.slane %v1517_v18, 4 }
  0xea   :  { %v1663_v13 = vperm.slane %v697_v14, %v1488_v55  ;;  %v875_v35 = vsel %vm636_vm8, %v630_v45, %v874_v3  ;;  %v945_v40 = vsel %vm636_vm8, %v944_v5, %v1618_v2  ;;  %v933_v29 = vsel %vm636_vm8, %v932_v9, %v1581_v15 }
  0xeb   :  { %v699_v28 = vsel %vm636_vm8, %v659_v48, %v698_v52  ;;  %v883_v48 = vperm.slane %v875_v35, %v1481_v49  ;;  %v873_v37 = vsel %vm636_vm8, %v872_v6, %v628_v38  ;;  %v946_v57 = vrot.slane %v1618_v2, 4 }
  0xec   :  { %v1673_v20 = vperm.slane %v699_v28, %v1488_v55  ;;  %v742_v26 = vrot.slane %v1663_v13, 4  ;;  %v879_v16 = vperm.slane %v873_v37, %v1481_v49  ;;  %v922_v4 = vrot.slane %v1621_v50, 4 }
  0xed   :  { %v643_v22 = vperm.slane %v637_v19, %v1481_v49  ;;  %1001 = vrot.lane.b32.xlu1 %v851_v33, %s1254_s6  ;;  %v920_v51 = vrot.slane %v883_v48, 4  ;;  %v684_v21 = vrot.slane %v1668_v7, 4  ;;  %v709_v15 = vsel %vm636_vm8, %v708_v47, %v1517_v18 }
  0xee   :  { %v745_v27 = vsel %vm636_vm8, %v744_v34, %v1673_v20  ;;  %v743_v44 = vsel %vm636_vm8, %v727_v31, %v742_v26  ;;  %v911_v53 = vsel %vm636_vm8, %v879_v16, %v910_v41  ;;  %v908_v59 = vrot.slane %v879_v16, 4 }
  0xef   :  { %1023 = vrot.lane.b32.xlu0 %v745_v27, %s1252_s3  ;;  %1011 = vrot.lane.b32.xlu2 %v743_v44, %s1253_s5  ;;  %v921_v2 = vsel %vm636_vm8, %v920_v51, %v1621_v50  ;;  %v951_v17 = vperm.slane %v945_v40, %v1488_v55  ;;  %v960_v49 = vrot.slane %v1683_v36, 4  ;;  %v939_v5 = vperm.slane %v933_v29, %v1488_v55 }
  0xf0   :  { %v844_v60 = vrot.slane %v1588_v24, 4  ;;  %v852_v61 = vrot.slane %v1613_v1, 4  ;;  %v927_v41 = vperm.slane %v921_v2, %v1488_v55  ;;  %v909_v62 = vsel %vm636_vm8, %v908_v59, %v1602_v39 }
  0xf1   :  { %v919_v18 = vperm.slane %v911_v53, %v1488_v55  ;;  %v915_v47 = vperm.slane %v909_v62, %v1488_v55  ;;  %v685_v50 = vsel %vm636_vm8, %v684_v21, %v643_v22  ;;  %v715_v10 = vperm.slane %v709_v15, %v1488_v55 }
  0xf2   :  { %v686_v0 = vrot.slane %v643_v22, 4  ;;  %v740_v43 = vrot.slane %v727_v31, 4  ;;  %v966_v46 = vrot.slane %v927_v41, 4  ;;  %v947_v24 = vsel %vm636_vm8, %v1606_v42, %v946_v57 }
  0xf3   :  { %v964_v1 = vrot.slane %v951_v17, 4  ;;  %v961_v58 = vsel %vm636_vm8, %v960_v49, %v919_v18  ;;  %v956_v8 = vrot.slane %v939_v5, 4  ;;  %v958_v12 = vrot.slane %v915_v47, 4 }
  0xf4   :  { %v967_v39 = vsel %vm636_vm8, %v951_v17, %v966_v46  ;;  %v691_v52 = vperm.slane %v685_v50, %v1488_v55  ;;  %v923_v14 = vsel %vm636_vm8, %v883_v48, %v922_v4  ;;  %v711_v38 = vsel %vm636_vm8, %v1502_v30, %v710_v25 }
  0xf5   :  { %v959_v42 = vsel %vm636_vm8, %v939_v5, %v958_v12  ;;  %v732_v9 = vrot.slane %v715_v10, 4  ;;  %v955_v45 = vperm.slane %v947_v24, %v1488_v55  ;;  %v687_v32 = vsel %vm636_vm8, %v1668_v7, %v686_v0 }
  0xf6   :  { %979 = vrot.lane.b32.xlu1 %v959_v42, %s1253_s5  ;;  %v1739_v28 = vsel %vm636_vm8, %v852_v61, %v1592_v63  ;;  %v1743_v34 = vsel %vm636_vm8, %v740_v43, %v1663_v13  ;;  %v845_v30 = vsel %vm636_vm8, %v844_v60, %v1575_v11  ;;  %v931_v3 = vperm.slane %v923_v14, %v1488_v55 }
  0xf7   :  { %991 = vrot.lane.b32.xlu2 %v961_v58, %s1252_s3  ;;  %1015 = vrot.lane.b32.xlu0 %v967_v39, %s1253_s5  ;;  %v719_v31 = vperm.slane %v711_v38, %v1488_v55  ;;  %v965_v26 = vsel %vm636_vm8, %v964_v1, %v927_v41  ;;  %v957_v6 = vsel %vm636_vm8, %v956_v8, %v915_v47  ;;  %v734_v7 = vrot.slane %v691_v52, 4 }
  0xf8   :  { %v733_v19 = vsel %vm636_vm8, %v732_v9, %v691_v52  ;;  %v968_v63 = vrot.slane %v955_v45, 4  ;;  %v695_v33 = vperm.slane %v687_v32, %v1488_v55  ;;  %v962_v44 = vrot.slane %v919_v18, 4 }
  0xf9   :  { %v736_v35 = vrot.slane %v719_v31, 4  ;;  %v735_v27 = vsel %vm636_vm8, %v715_v10, %v734_v7  ;;  %v858_v37 = vrot.slane %v1624_v54, 4  ;;  %v970_v16 = vrot.slane %v931_v3, 4 }
  0xfa   :  { %v969_v13 = vsel %vm636_vm8, %v968_v63, %v931_v3  ;;  %v738_v48 = vrot.slane %v695_v33, 4  ;;  %v963_v55 = vsel %vm636_vm8, %v1683_v36, %v962_v44  ;;  %v746_v29 = vrot.slane %v1673_v20, 4 }
  0xfb   :  { %v737_v11 = vsel %vm636_vm8, %v736_v35, %v695_v33  ;;  %v859_v40 = vsel %vm636_vm8, %v1627_v56, %v858_v37  ;;  %v971_v57 = vsel %vm636_vm8, %v955_v45, %v970_v16 }
  0xfc   :  { %v739_v25 = vsel %vm636_vm8, %v719_v31, %v738_v48  ;;  %v747_v54 = vsel %vm636_vm8, %v1649_v23, %v746_v29 }
  0xfe   :  { %987 = vrot.lane.b32.xlu1 %v737_v11, %s1252_s3 }
  0xff   :  { %1027 = vrot.lane.b32.xlu2 %v969_v13, %s1252_s3  ;;  %975 = vrot.lane.b32.xlu0 %v735_v27, %s1253_s5 }
 0x106   :  { %1037 = vrot.lane.b32.xlu1 %v859_v40, %s1254_s6 }
 0x107   :  { %1003 = vrot.lane.b32.xlu2 %v963_v55, %s1254_s6  ;;  %999 = vrot.lane.b32.xlu0 %v739_v25, %s1254_s6 }
 0x10f   :  { %1039 = vrot.lane.b32.xlu2 %v971_v57, %s1254_s6  ;;  %1035 = vrot.lane.b32.xlu0 %v747_v54, %s1254_s6 }
 0x13c   :  { %v1014_v36 = vpop.permute.xlu2 %1013 }
 0x13d   :  { %v1056_v24 = vsel %vm89_vm0, %v1739_v28, %v1014_v36 }
 0x149   :  { %v1012_v4 = vpop.permute.xlu2 %1011 }
 0x14a   :  { %v1055_v52 = vsel %vm89_vm0, %v1743_v34, %v1012_v4 }
 0x14f   :  { %v990_v51 = vpop.permute.xlu1 %989 }
 0x151   :  { %v992_v22 = vpop.permute.xlu2 %991  ;;  %v978_v21 = vpop.permute.xlu0 %977 }
 0x152   :  { %v1045_v59 = vsel %vm89_vm0, %v845_v30, %v978_v21 }
 0x153   :  { %v1049_v23 = vsel %vm1047_vm9, %v1045_v59, %v990_v51 }
 0x157   :  { %v1026_v53 = vpop.permute.xlu1 %1025 }
 0x158   :  { %v1059_v58 = vsel %vm1047_vm9, %v1056_v24, %v1026_v53 }
 0x159   :  { %v1028_v56 = vpop.permute.xlu2 %1027 }
 0x15f   :  { %v1002_v2 = vpop.permute.xlu1 %1001 }
 0x160   :  { %v1053_v17 = vsel %vm1051_vm10, %v1049_v23, %v1002_v2 }
 0x161   :  { %v1024_v20 = vpop.permute.xlu0 %1023  ;;  %v1004_v15 = vpop.permute.xlu2 %1003  ;;  %1066 = vst [vmem:[#allocation8 + $0x10] sm:$0xff] %v1053_v17 }
 0x162   :  { %v1058_v14 = vsel %vm1047_vm9, %v1055_v52, %v1024_v20 }
 0x168   :  { %v980_v61 = vpop.permute.xlu1 %979 }
 0x169   :  { %v1016_v49 = vpop.permute.xlu0 %1015  ;;  %v1040_v5 = vpop.permute.xlu2 %1039  ;;  %v1046_v62 = vsel %vm89_vm0, %v957_v6, %v980_v61 }
 0x16a   :  { %v1057_v60 = vsel %vm89_vm0, %v965_v26, %v1016_v49  ;;  %v1050_v47 = vsel %vm1047_vm9, %v1046_v62, %v992_v22 }
 0x16b   :  { %v1060_v41 = vsel %vm1047_vm9, %v1057_v60, %v1028_v56  ;;  %v1054_v50 = vsel %vm1051_vm10, %v1050_v47, %v1004_v15 }
 0x16c   :  { %v1063_v18 = vsel %vm1051_vm10, %v1060_v41, %v1040_v5  ;;  %1068 = vst [vmem:[#allocation8 + $0x20] sm:$0xff] %v1054_v50 }
 0x16d   :  { %1069 = vst [vmem:[#allocation8 + $0x28] sm:$0xff] %v1063_v18 }
 0x170   :  { %v988_v0 = vpop.permute.xlu1 %987 }
 0x171   :  { %v976_v10 = vpop.permute.xlu0 %975 }
 0x172   :  { %v1044_v43 = vsel %vm89_vm0, %v733_v19, %v976_v10 }
 0x173   :  { %v1048_v46 = vsel %vm1047_vm9, %v1044_v43, %v988_v0 }
 0x178   :  { %v1038_v12 = vpop.permute.xlu1 %1037 }
 0x179   :  { %v1000_v1 = vpop.permute.xlu0 %999  ;;  %v1062_v39 = vsel %vm1051_vm10, %v1059_v58, %v1038_v12 }
 0x17a   :  { %v1052_v8 = vsel %vm1051_vm10, %v1048_v46, %v1000_v1  ;;  %1067 = vst [vmem:[#allocation8 + $0x18] sm:$0xff] %v1062_v39 }
 0x17b   :  { %1064 = vst [vmem:[#allocation8] sm:$0xff] %v1052_v8 }
 0x181   :  { %v1036_v38 = vpop.permute.xlu0 %1035 }
 0x182   :  { %v1061_v42 = vsel %vm1051_vm10, %v1058_v14, %v1036_v38 }
 0x183   :  { %1065 = vst [vmem:[#allocation8 + $0x8] sm:$0xff] %v1061_v42 }
 0x184   :  { %1082 = dma.vmem_to_hbm [thread:$0]  %s1075_s8, 768, %s1077_s11, [#allocation4], %s1256_s12, %s1256_s12, %s1257_s13  }
 0x185   :  { %1243 = dma.done.wait [#allocation4], 768  }
 0x186   :  { %1244 = vsyncadd [#allocation4], 4294966528 }
 0x187   :  { %1087 = vsyncpa [#allocation3], 1 }
 0x188   :  { %1088 = vsyncpa [#allocation6], 1 }
 0x189   :  { %1089 = vsyncpa [#allocation4], 1 }

</bundles_post_ra>
